<compile_context>
chip_gen: v6e
topology: v6e:2x2x1
jax: 0.10.0
libtpu: 0.0.40
codegen_flags: <defaults>
</compile_context>

<pallas_src>
import jax
import jax.numpy as jnp
from jax.experimental import pallas as pl
from jax.experimental.pallas import tpu as pltpu


def _add_one_kernel(x_ref, o_ref):
    # Whole tile resident in VMEM; trivial VPU elementwise add (hidden under DMA).
    o_ref[...] = x_ref[...] + jnp.asarray(1, dtype=o_ref.dtype)


# Minimum second-to-last tile multiple per element size (sub-32-bit packs sublanes).
_SUBLANE_FOR_ITEMSIZE = {1: 32, 2: 16, 4: 8, 8: 8}

# ~1 MiB per block buffer: with input+output each double-buffered (4 buffers),
# this stays far below the scoped-VMEM defaults on v5e (16 MiB) / v6e / v7x (32 MiB)
# while sitting on the ~85% HBM-roofline plateau for tiled elementwise ops.
_TARGET_BLOCK_BYTES = 1 << 20


def _add_one_2d(x2d, block_rows):
    rows, width = x2d.shape
    nbytes = x2d.size * x2d.dtype.itemsize
    return pl.pallas_call(
        _add_one_kernel,
        out_shape=jax.ShapeDtypeStruct((rows, width), x2d.dtype),
        grid=(pl.cdiv(rows, block_rows),),
        in_specs=[pl.BlockSpec((block_rows, width), lambda i: (i, 0))],
        out_specs=pl.BlockSpec((block_rows, width), lambda i: (i, 0)),
        compiler_params=pltpu.CompilerParams(
            dimension_semantics=("parallel",)),
        cost_estimate=pl.CostEstimate(
            flops=x2d.size, transcendentals=0, bytes_accessed=2 * nbytes),
    )(x2d)


def _pick_block_rows(rows, width, sublane, itemsize):
    if rows < sublane:
        # Tiny input: single block equal to the full array dims (always legal).
        return rows
    target_rows = max(
        sublane, (_TARGET_BLOCK_BYTES // (width * itemsize)) // sublane * sublane
    )
    rows_floor = max(sublane, (rows // sublane) * sublane)
    return min(rows_floor, target_rows)


def tudui_forward(x):
    """Pallas equivalent of Tudui.forward: return x + 1 (elementwise)."""
    x = jnp.asarray(x)
    orig_shape = x.shape
    n = int(x.size)
    if n == 0:
        return x
    itemsize = x.dtype.itemsize
    sublane = _SUBLANE_FOR_ITEMSIZE.get(itemsize, 8)

    # Widest lane-dense last dim that divides n exactly => zero host pad/slice.
    width = next((w for w in (1024, 512, 256, 128) if n % w == 0), None)

    if width is not None:
        rows = n // width
        x2d = x.reshape(rows, width)
        block_rows = _pick_block_rows(rows, width, sublane, itemsize)
        # NOTE: input_output_aliases={0: 0} could also be passed here to let XLA
        # reuse the input buffer for the output when the input is donatable.
        return _add_one_2d(x2d, block_rows).reshape(orig_shape)

    # Ragged case: pad only the tail up to a full (sublane x 512) tile, slice back.
    width = 512
    rows = pl.cdiv(pl.cdiv(n, width), sublane) * sublane
    pad = rows * width - n
    x2d = jnp.pad(x.reshape(-1), (0, pad)).reshape(rows, width)
    block_rows = _pick_block_rows(rows, width, sublane, itemsize)
    y2d = _add_one_2d(x2d, block_rows)
    return y2d.reshape(-1)[:n].reshape(orig_shape)


if __name__ == "__main__":
    key = jax.random.PRNGKey(0)
    k1, k2 = jax.random.split(key)

    # Small NCHW-like input consistent with the module's shape-agnostic forward.
    x = jax.random.normal(k1, (2, 4, 16, 16), dtype=jnp.float32)
    y = tudui_forward(x)
    jax.block_until_ready(y)
    assert y.shape == x.shape and y.dtype == x.dtype
    assert jnp.allclose(y, x + 1.0, atol=1e-6)

    # Larger input exercising the multi-block, pipelined path (grid > 1).
    x_big = jax.random.normal(k2, (2, 16, 256, 128), dtype=jnp.float32)
    y_big = tudui_forward(x_big)
    jax.block_until_ready(y_big)
    assert jnp.allclose(y_big, x_big + 1.0, atol=1e-6)

    # bf16 exercises the dtype-aware sublane rounding (16-row packing).
    x_bf16 = x_big.astype(jnp.bfloat16)
    y_bf16 = tudui_forward(x_bf16)
    jax.block_until_ready(y_bf16)
    assert jnp.allclose(y_bf16.astype(jnp.float32),
                        (x_bf16 + 1).astype(jnp.float32))

    # Ragged size (not a multiple of 128) exercises the pad-tail fallback.
    x_rag = jax.random.normal(k1, (3, 5, 7), dtype=jnp.float32)
    y_rag = tudui_forward(x_rag)
    jax.block_until_ready(y_rag)
    assert jnp.allclose(y_rag, x_rag + 1.0, atol=1e-6)

    # The exact scalar example from the original script: x = 1.0 -> 2.0.
    y_scalar = tudui_forward(jnp.asarray(1.0, dtype=jnp.float32))
    jax.block_until_ready(y_scalar)
    assert jnp.allclose(y_scalar, 2.0)

    print("KERNEL_OK")
</pallas_src>

<mosaic_0001>
module attributes {stable_mosaic.version = 11 : i64} {
  func.func @_add_one_kernel(%arg0: i32, %arg1: memref<2x1024xf32, #tpu.memory_space<vmem>>, %arg2: memref<2x1024xf32, #tpu.memory_space<vmem>>) attributes {dimension_semantics = [#tpu.dimension_semantics<parallel>], iteration_bounds = array<i64: 1>, scalar_prefetch = 0 : i64, scratch_operands = 0 : i64, tpu.core_type = #tpu.core_type<tc>, window_params = [{transform_indices = @transform_0, window_bounds = array<i64: 2, 1024>}, {transform_indices = @transform_1, window_bounds = array<i64: 2, 1024>}]} {
    %c0 = arith.constant 0 : index
    %c0_0 = arith.constant 0 : index
    %0 = vector.load %arg1[%c0, %c0_0] : memref<2x1024xf32, #tpu.memory_space<vmem>>, vector<2x1024xf32>
    %cst = arith.constant 1.000000e+00 : f32
    %1 = vector.broadcast %cst : f32 to vector<2x1024xf32>
    %2 = arith.addf %0, %1 : vector<2x1024xf32>
    %c0_1 = arith.constant 0 : index
    %c0_2 = arith.constant 0 : index
    %3 = vector.load %arg2[%c0_1, %c0_2] : memref<2x1024xf32, #tpu.memory_space<vmem>>, vector<2x1024xf32>
    tpu.vector_store %arg2[%c0_1, %c0_2], %2 {strides = array<i32>} : memref<2x1024xf32, #tpu.memory_space<vmem>>, vector<2x1024xf32>,
    return
  }
  func.func @transform_0(%arg0: i32) -> (i32, i32) {
    %c0_i32 = arith.constant 0 : i32
    %c0_i32_0 = arith.constant 0 : i32
    return %arg0, %c0_i32 : i32, i32
  }
  func.func @transform_1(%arg0: i32) -> (i32, i32) {
    %c0_i32 = arith.constant 0 : i32
    %c0_i32_0 = arith.constant 0 : i32
    return %arg0, %c0_i32 : i32, i32
  }
}

</mosaic_0001>

<bundles_post_ra>
// kernel: tpu_custom_call.1
= control target key start
LH: loop header
LB: loop body
LE: loop exit
PB: predicated region body
PF: predicated region fallthrough
CT: control target
= control target key end

     0   :  { %6 = vsyncpa [#allocation3], 0  ;;  %s106_s0 = inlined_call_operand.hbm [shape: f32[2,1024], index: 0, kind: input, shape index: {}]   ;;  %s107_s1 = inlined_call_operand.hbm [shape: f32[2,1024], index: 1, kind: output, shape index: {}]  }
   0x1   :  { %7 = vsyncpa [#allocation4], 0  ;;  %s88_s6 = smov [#allocation2]  }
   0x2   :  { %s14_s7 = sshll.u32 %s88_s6, 4  ;;  %s15_s7 = int_to_ptr.vmem [resolvable:$true] %s14_s7 }
   0x3   :  { %s52_s8 = scalar_lea.vmem %s15_s7, 256  ;;  %p57_p1 = scmp.lt.s32.totalorder %s15_s7, %s15_s7 }
   0x4   :  { %p53_p0 = scmp.ne.s32.totalorder %s15_s7, %s52_s8  ;;  %p58_p2 = scmp.lt.s32.totalorder %s52_s8, %s52_s8 }
   0x6   :  { %p59_p3 = por %p58_p2, %p57_p1 }
   0x8   :  { %p60_p4 = pnand %p59_p3, %p53_p0 }
   0xa   :  { %63 = shalt.err (!%p60_p4)
}
   0xb   :  { %17 = dma.hbm_to_vmem [thread:$0]  %s106_s0, 256, %s15_s7, [#allocation3]  }
   0xc   :  { %84 = dma.done.wait [#allocation3], 256  }
   0xd   :  { %85 = vsyncadd [#allocation3], 4294967040  ;;  %s89_s11 = smov [#allocation5]   ;;  %v21_v0 = vld [vmem:[#allocation2] sm:$0xff]  ;;  %v22_v1 = vld [vmem:[#allocation2 + $0x8] sm:$0xff] }
   0xe   :  { %s33_s12 = sshll.u32 %s89_s11, 4  ;;  %v23_v2 = vadd.f32 1.0, %v21_v0  ;;  %v24_v3 = vadd.f32 1.0, %v22_v1  ;;  %s34_s12 = int_to_ptr.vmem [resolvable:$true] %s33_s12 }
   0xf   :  { %s64_s13 = scalar_lea.vmem %s34_s12, 256  ;;  %p69_p6 = scmp.lt.s32.totalorder %s34_s12, %s34_s12 }
  0x10   :  { %25 = vst [vmem:[#allocation5] sm:$0xff] %v23_v2  ;;  %26 = vst [vmem:[#allocation5 + $0x8] sm:$0xff] %v24_v3  ;;  %p65_p5 = scmp.ne.s32.totalorder %s34_s12, %s64_s13  ;;  %p70_p7 = scmp.lt.s32.totalorder %s64_s13, %s64_s13 }
  0x12   :  { %p71_p8 = por %p70_p7, %p69_p6 }
  0x14   :  { %p72_p9 = pnand %p71_p8, %p65_p5 }
  0x16   :  { %75 = shalt.err (!%p72_p9)
}
  0x17   :  { %36 = dma.vmem_to_hbm [thread:$0]  %s34_s12, 256, %s107_s1, [#allocation4]  }
  0x18   :  { %86 = dma.done.wait [#allocation4], 256  }
  0x19   :  { %87 = vsyncadd [#allocation4], 4294967040 }
  0x1a   :  { %40 = vsyncpa [#allocation3], 1 }
  0x1b   :  { %41 = vsyncpa [#allocation4], 1 }

</bundles_post_ra>
